<compile_context>
chip_gen: v5e
topology: v5e:2x2
jax: 0.10.0
libtpu: 0.0.40
codegen_flags: <defaults>
</compile_context>

<pallas_src>
import functools

import jax
import jax.numpy as jnp
from jax import lax
from jax.experimental import pallas as pl
from jax.experimental.pallas import tpu as pltpu


def _sr_kernel(xj_ref, us_ref, w2_ref, b2_ref, out_ref, *, C, HW, rq,
               use_bf16_matmul):
    # xj_ref : (1, C, TN)    this tile's spatial columns of x
    # us_ref : (1, C, HW)    precomputed us = W1 x + b1, resident per batch
    # w2_ref : (C, C)        second 1x1-conv weight (out_ch, in_ch), resident
    # b2_ref : (C, 1)        second bias (channel-on-sublane), resident
    # out_ref: (1, C+HW, TN) one column tile of the fused [feats; rel] slab
    xj = xj_ref[0]                                         # (C, TN)

    # feats passthrough -> rows [0:C] of the concatenated output.
    out_ref[0, 0:C, :] = xj.astype(out_ref.dtype)

    # vs = W2 @ x_tile + b2 -> (C, TN); channels on sublanes, TN lane-dense.
    vs = jnp.dot(w2_ref[...], xj, preferred_element_type=jnp.float32)
    vs = vs + b2_ref[...]
    if use_bf16_matmul:
        vs = vs.astype(jnp.bfloat16)

    # rel[i, n] = sum_c us[c, i] * vs[c, n]; relu; rows [C:] of the output.
    # Row-chunked so one (rq, TN) f32 chunk stays within ~half the vreg file.
    for r0 in range(0, HW, rq):
        r1 = min(r0 + rq, HW)
        us_chunk = us_ref[0, :, r0:r1]                     # (C, r1-r0)
        if use_bf16_matmul:
            us_chunk = us_chunk.astype(jnp.bfloat16)
        rel = lax.dot_general(us_chunk, vs, (((0,), (0,)), ((), ())),
                              preferred_element_type=jnp.float32)
        out_ref[0, C + r0:C + r1, :] = jnp.maximum(rel, 0.0).astype(out_ref.dtype)


def _vmem_capacity_bytes():
    try:
        info = pltpu.get_tpu_info()
        cap = getattr(info, "vmem_capacity_bytes", None)
        if cap:
            return int(cap)
    except Exception:
        pass
    return 64 << 20                     # conservative: v7x per-TensorCore VMEM


def _pick_rq(HW, TN):
    """rel row chunk: (rq, TN) f32 <= 128 KiB; rq multiple of 128 (or of 8)."""
    rq = max(8, (128 * 1024) // (TN * 4))
    rq = (rq // 128) * 128 if rq >= 128 else (rq // 8) * 8
    return max(8, min(HW, rq))


def _est_vmem_bytes(C, HW, TN, rq, out_bytes):
    dbl = 2                                        # Pallas double-buffers blocks
    out_blk = dbl * (C + HW) * TN * out_bytes
    x_blk = dbl * C * TN * 4
    us_blk = dbl * C * HW * 4                      # resident per batch
    w_blk = dbl * (C * C + C) * 4
    tmps = (C * TN + 2 * rq * TN + C * rq) * 4     # vs + rel chunk + us chunk
    return out_blk + x_blk + us_blk + w_blk + tmps + (2 << 20)


def _pick_tn(C, HW, budget, out_bytes):
    """Lane-dense column tile: multiple of 128, divides HW, fits VMEM budget."""
    cands = [t for t in (512, 256, 128) if HW % t == 0]
    if not cands:
        return HW                                  # tiny / odd spatial sizes
    for need_pipeline in (True, False):            # prefer >=2 grid steps on j
        for t in cands:
            if need_pipeline and HW // t < 2:
                continue
            if _est_vmem_bytes(C, HW, t, _pick_rq(HW, t), out_bytes) <= budget:
                return t
    return cands[-1]                               # smallest; clamp limit later


def sr_module(feats, w1, b1, w2, b2, *, out_dtype=jnp.float32,
              use_bf16_matmul=False):
    """feats: (B, C, H, W); w*: (C, C) 1x1-conv weights; b*: (C,) biases.

    Returns concat([feats, relu(us^T vs)], axis=1) of shape (B, C+H*W, H, W).
    """
    B, C, H, W = feats.shape
    HW = H * W
    x = feats.reshape(B, C, HW).astype(jnp.float32)

    # us = W1 x + b1 once per batch (tiny channel matmul), channel-on-sublane.
    us = jnp.einsum("oc,bch->boh", w1.astype(jnp.float32), x) + b1[None, :, None]
    b2c = b2.reshape(C, 1).astype(jnp.float32)

    out_bytes = jnp.dtype(out_dtype).itemsize
    cap = _vmem_capacity_bytes()
    budget = (cap * 3) // 4                        # ~96 MiB v5e/v6e, ~48 MiB v7x
    tn = _pick_tn(C, HW, budget, out_bytes)
    rq = _pick_rq(HW, tn)
    nj = max(1, HW // tn)

    est = _est_vmem_bytes(C, HW, tn, rq, out_bytes)
    vmem_limit = int(min(max(est + (4 << 20), 16 << 20), (cap * 9) // 10))

    kernel = functools.partial(_sr_kernel, C=C, HW=HW, rq=rq,
                               use_bf16_matmul=use_bf16_matmul)
    out = pl.pallas_call(
        kernel,
        out_shape=jax.ShapeDtypeStruct((B, C + HW, HW), out_dtype),
        grid_spec=pltpu.PrefetchScalarGridSpec(
            num_scalar_prefetch=0,
            grid=(B, nj),
            in_specs=[
                pl.BlockSpec((1, C, tn), lambda b, j: (b, 0, j)),   # x columns
                pl.BlockSpec((1, C, HW), lambda b, j: (b, 0, 0)),   # us resident
                pl.BlockSpec((C, C), lambda b, j: (0, 0)),          # w2
                pl.BlockSpec((C, 1), lambda b, j: (0, 0)),          # b2
            ],
            out_specs=pl.BlockSpec((1, C + HW, tn), lambda b, j: (b, 0, j)),
        ),
        compiler_params=pltpu.CompilerParams(
            dimension_semantics=("parallel", "parallel"),
            vmem_limit_bytes=vmem_limit),
    )(x, us, w2.astype(jnp.float32), b2c)

    # Free row-major reshape, matches torch's NCHW concatenated output.
    return out.reshape(B, C + HW, H, W)


def _reference(feats, w1, b1, w2, b2):
    B, C, H, W = feats.shape
    HW = H * W
    x = feats.reshape(B, C, HW)
    us = jnp.einsum("oc,bch->boh", w1, x) + b1[None, :, None]
    vs = jnp.einsum("oc,bch->boh", w2, x) + b2[None, :, None]
    rel = jnp.einsum("bci,bcj->bij", us, vs)
    rel = jnp.maximum(rel, 0.0).reshape(B, HW, H, W)
    return jnp.concatenate([feats, rel], axis=1)


if __name__ == "__main__":
    B, C, H, W = 2, 4, 16, 16
    key = jax.random.PRNGKey(0)
    kf, k1, kb1, k2, kb2 = jax.random.split(key, 5)

    feats = jax.random.normal(kf, (B, C, H, W), dtype=jnp.float32)
    # Deterministic synthetic 1x1-conv parameters (out_ch, in_ch) and biases.
    w1 = jax.random.normal(k1, (C, C), dtype=jnp.float32) * 0.1
    b1 = jax.random.normal(kb1, (C,), dtype=jnp.float32) * 0.1
    w2 = jax.random.normal(k2, (C, C), dtype=jnp.float32) * 0.1
    b2 = jax.random.normal(kb2, (C,), dtype=jnp.float32) * 0.1

    out = jax.block_until_ready(sr_module(feats, w1, b1, w2, b2))
    ref = _reference(feats, w1, b1, w2, b2)

    assert out.shape == (B, C + H * W, H, W), out.shape
    assert jnp.allclose(out, ref, atol=1e-4, rtol=1e-4), \
        float(jnp.max(jnp.abs(out - ref)))

    print("KERNEL_OK")
</pallas_src>

<mosaic_0001>
module attributes {stable_mosaic.version = 11 : i64} {
  func.func @_sr_kernel(%arg0: i32, %arg1: i32, %arg2: memref<1x4x128xf32, #tpu.memory_space<vmem>>, %arg3: memref<1x4x256xf32, #tpu.memory_space<vmem>>, %arg4: memref<4x4xf32, #tpu.memory_space<vmem>>, %arg5: memref<4x1xf32, #tpu.memory_space<vmem>>, %arg6: memref<1x260x128xf32, #tpu.memory_space<vmem>>) attributes {dimension_semantics = [#tpu.dimension_semantics<parallel>, #tpu.dimension_semantics<parallel>], iteration_bounds = array<i64: 2, 2>, scalar_prefetch = 0 : i64, scratch_operands = 0 : i64, tpu.core_type = #tpu.core_type<tc>, window_params = [{transform_indices = @transform_0, window_bounds = array<i64: 1, 4, 128>}, {transform_indices = @transform_1, window_bounds = array<i64: 1, 4, 256>}, {pipeline_mode = #tpu.pipeline_mode<synchronous>, transform_indices = @transform_2, window_bounds = array<i64: 4, 4>}, {pipeline_mode = #tpu.pipeline_mode<synchronous>, transform_indices = @transform_3, window_bounds = array<i64: 4, 1>}, {transform_indices = @transform_4, window_bounds = array<i64: 1, 260, 128>}]} {
    %c0 = arith.constant 0 : index
    %c0_0 = arith.constant 0 : index
    %c0_1 = arith.constant 0 : index
    %0 = vector.load %arg2[%c0, %c0_0, %c0_1] : memref<1x4x128xf32, #tpu.memory_space<vmem>>, vector<1x4x128xf32>
    %1 = vector.shape_cast %0 : vector<1x4x128xf32> to vector<4x128xf32>
    %c0_2 = arith.constant 0 : index
    %c0_3 = arith.constant 0 : index
    %c0_4 = arith.constant 0 : index
    %2 = vector.load %arg6[%c0_2, %c0_3, %c0_4] : memref<1x260x128xf32, #tpu.memory_space<vmem>>, vector<1x4x128xf32>
    %3 = vector.shape_cast %2 : vector<1x4x128xf32> to vector<4x128xf32>
    %4 = vector.shape_cast %1 : vector<4x128xf32> to vector<1x4x128xf32>
    tpu.vector_store %arg6[%c0_2, %c0_3, %c0_4], %4 {strides = array<i32>} : memref<1x260x128xf32, #tpu.memory_space<vmem>>, vector<1x4x128xf32>,
    %c0_5 = arith.constant 0 : index
    %c0_6 = arith.constant 0 : index
    %5 = vector.load %arg4[%c0_5, %c0_6] : memref<4x4xf32, #tpu.memory_space<vmem>>, vector<4x4xf32>
    %cst = arith.constant dense<0.000000e+00> : vector<4x128xf32>
    %6 = tpu.matmul %5, %1, %cst {dimension_numbers = #tpu.dot_dimension_numbers<[1], [0], [0], [1], [0, 0, 1, 1], [], []>} : vector<4x4xf32>, vector<4x128xf32>, vector<4x128xf32> -> vector<4x128xf32>
    %c0_7 = arith.constant 0 : index
    %c0_8 = arith.constant 0 : index
    %7 = vector.load %arg5[%c0_7, %c0_8] : memref<4x1xf32, #tpu.memory_space<vmem>>, vector<4x1xf32>
    %8 = vector.broadcast %7 : vector<4x1xf32> to vector<4x128xf32>
    %9 = arith.addf %6, %8 : vector<4x128xf32>
    %c0_9 = arith.constant 0 : index
    %c0_10 = arith.constant 0 : index
    %c0_11 = arith.constant 0 : index
    %10 = vector.load %arg3[%c0_9, %c0_10, %c0_11] : memref<1x4x256xf32, #tpu.memory_space<vmem>>, vector<1x4x256xf32>
    %11 = vector.shape_cast %10 : vector<1x4x256xf32> to vector<4x256xf32>
    %cst_12 = arith.constant dense<0.000000e+00> : vector<256x128xf32>
    %12 = tpu.matmul %11, %9, %cst_12 {dimension_numbers = #tpu.dot_dimension_numbers<[0], [0], [1], [1], [0, 1, 1, 1], [], []>} : vector<4x256xf32>, vector<4x128xf32>, vector<256x128xf32> -> vector<256x128xf32>
    %cst_13 = arith.constant 0.000000e+00 : f32
    %13 = vector.broadcast %cst_13 : f32 to vector<256x128xf32>
    %14 = arith.maximumf %12, %13 : vector<256x128xf32>
    %c0_14 = arith.constant 0 : index
    %c4 = arith.constant 4 : index
    %c0_15 = arith.constant 0 : index
    %15 = vector.load %arg6[%c0_14, %c4, %c0_15] : memref<1x260x128xf32, #tpu.memory_space<vmem>>, vector<1x256x128xf32>
    %16 = vector.shape_cast %15 : vector<1x256x128xf32> to vector<256x128xf32>
    %17 = vector.shape_cast %14 : vector<256x128xf32> to vector<1x256x128xf32>
    tpu.vector_store %arg6[%c0_14, %c4, %c0_15], %17 {strides = array<i32>} : memref<1x260x128xf32, #tpu.memory_space<vmem>>, vector<1x256x128xf32>,
    return
  }
  func.func @transform_0(%arg0: i32, %arg1: i32) -> (i32, i32, i32) {
    %c0_i32 = arith.constant 0 : i32
    %c0_i32_0 = arith.constant 0 : i32
    return %arg0, %c0_i32, %arg1 : i32, i32, i32
  }
  func.func @transform_1(%arg0: i32, %arg1: i32) -> (i32, i32, i32) {
    %c0_i32 = arith.constant 0 : i32
    %c0_i32_0 = arith.constant 0 : i32
    %c0_i32_1 = arith.constant 0 : i32
    return %arg0, %c0_i32, %c0_i32_0 : i32, i32, i32
  }
  func.func @transform_2(%arg0: i32, %arg1: i32) -> (i32, i32) {
    %c0_i32 = arith.constant 0 : i32
    %c0_i32_0 = arith.constant 0 : i32
    %c0_i32_1 = arith.constant 0 : i32
    return %c0_i32, %c0_i32_0 : i32, i32
  }
  func.func @transform_3(%arg0: i32, %arg1: i32) -> (i32, i32) {
    %c0_i32 = arith.constant 0 : i32
    %c0_i32_0 = arith.constant 0 : i32
    %c0_i32_1 = arith.constant 0 : i32
    return %c0_i32, %c0_i32_0 : i32, i32
  }
  func.func @transform_4(%arg0: i32, %arg1: i32) -> (i32, i32, i32) {
    %c0_i32 = arith.constant 0 : i32
    %c0_i32_0 = arith.constant 0 : i32
    return %arg0, %c0_i32, %arg1 : i32, i32, i32
  }
}

</mosaic_0001>

<bundles_post_ra>
// kernel: tpu_custom_call.1
= control target key start
LH: loop header
LB: loop body
LE: loop exit
PB: predicated region body
PF: predicated region fallthrough
CT: control target
= control target key end

     0   :  { %s1606_s0 = inlined_call_operand.hbm [shape: f32[2,4,256], index: 0, kind: input, shape index: {}]   ;;  %s1607_s1 = inlined_call_operand.hbm [shape: f32[2,4,256], index: 1, kind: input, shape index: {}]   ;;  %s1608_s2 = inlined_call_operand.vmem [shape: f32[4,4], index: 2, kind: input, shape index: {}]   ;;  %s1609_s3 = inlined_call_operand.vmem [shape: f32[4,1], index: 3, kind: input, shape index: {}]   ;;  %s1610_s4 = inlined_call_operand.vmem [shape: f32[2,260,256], index: 4, kind: output, shape index: {}]  }
   0x1   :  { %1614 = sst [smem:[#allocation13_spill]] %s1606_s0 }
   0x2   :  { %9 = vsyncpa [#allocation3], 0 }
   0x3   :  { %11 = vsyncpa [#allocation3 + $0x1], 0 }
   0x4   :  { %12 = vsyncpa [#allocation5], 0 }
   0x5   :  { %14 = vsyncpa [#allocation5 + $0x1], 0  ;;  %s1267_s15 = smov 0   ;;  %s1269_s16 = smov 0  }
   0x6   :  { %s1271_s17 = smov 0   ;;  %s1273_s18 = smov 0  }
   0x7   :  { %s1275_s19 = smov 0   ;;  %s1277_s20 = smov 0  }
   0x8   :  { %s1279_s21 = smov 0   ;;  %s1281_s22 = smov 0  }
   0x9   :  { %s1283_s23 = smov 0   ;;  %s1285_s24 = smov 0  }
   0xa   :  { %s1287_s25 = smov 0  }
   0xb LB: > { %1615 = sst [smem:[#allocation9_spill]] %s1235_s24  ;;  %s925_s26 = sadd.s32 4294967295, %s1239_s25   ;;  %s1239_s25 = sphi %s1287_s25, %s20_s25   ;;  %s1235_s24 = sphi %s1285_s24, %s1629_s24   ;;  %s1231_s23 = sphi %s1283_s23, %s1637_s23   ;;  %s1227_s22 = sphi %s1281_s22, %s1627_s22   ;;  %s1223_s21 = sphi %s1279_s21, %s1636_s21   ;;  %s1219_s20 = sphi %s1277_s20, %s1635_s20   ;;  %s1215_s19 = sphi %s1275_s19, %s1634_s19   ;;  %s1211_s18 = sphi %s1273_s18, %s1633_s18   ;;  %s1207_s17 = sphi %s1271_s17, %s1632_s17   ;;  %s1203_s16 = sphi %s1269_s16, %s1631_s16   ;;  %s1199_s15 = sphi %s1267_s15, %s1630_s15  }
   0xc   : > { %s29_s27 = sadd.s32 1, %s1231_s23  ;;  %s32_s28 = sadd.s32 1, %s1235_s24 }
   0xd   : > { %p30_p0 = scmp.ge.s32.totalorder %s29_s27, 2  ;;  %s41_s29 = sadd.s32 1, %s1219_s20 }
   0xe   : > { %p48_p1 = scmp.ne.s32.totalorder %s1219_s20, %s1215_s19  ;;  %p49_p2 = scmp.eq.s32.totalorder %s1239_s25, 0 }
   0xf   : > { %s1639_s27 = smov (%p30_p0, %s29_s27), 0  ;;  %s1641_s28 = smov (!%p30_p0, %s32_s28), %s1235_s24 }
  0x10   : > { %1616 = sst [smem:[#allocation10_spill]] %s1639_s27  ;;  %s37_s30 = ssub.s32 %s1231_s23, %s1639_s27 }
  0x11   : > { %p34_p3 = scmp.ge.s32.totalorder %s1641_s28, 2  ;;  %p54_p4 = scmp.ne.s32.totalorder %s1215_s19, %s1211_s18 }
  0x12   : > { %p1338_p5 = por %p49_p2, %p48_p1  ;;  %p1342_p6 = scmp.eq.s32.totalorder %s925_s26, 0 }
  0x13   : > { %s1643_s28 = smov (%p34_p3, %s1641_s28), 0  ;;  %p148_p8 = scmp.eq.s32.totalorder %s925_s26, 3 }
  0x14   : > { %1619 = sst [smem:[#allocation11_spill]] %s1643_s28  ;;  %p1350_p7 = por %p1342_p6, %p54_p4 }
  0x15   : > { %s36_s8 = ssub.s32 %s1235_s24, %s1643_s28  ;;  %p1359_p11 = por %p148_p8, %p48_p1 }
  0x16   : > { %s38_s9 = sor.u32 %s37_s30, %s36_s8  ;;  %p65_p9 = scmp.eq.s32.totalorder %s36_s8, 0 }
  0x17   : > { %p39_p10 = scmp.eq.s32.totalorder %s38_s9, 0  ;;  %p993_p12 = scmp.lt.s32.totalorder %s1239_s25, 4 }
  0x18   : > { %s180_s11 = sand.u32 1, %s1219_s20   ;;  %s930_s14 = sshll.u32 %s1235_s24, 1 }
  0x19   : > { %s1366_s12 = scalar_select %p39_p10, %s1219_s20, %s41_s29  }
  0x1a   : > { %s929_s13 = sshll.u32 %s180_s11, 2  ;;  %s188_s18 = sadd.s32 %s1231_s23, %s930_s14 }
  0x1b   : > { %1622 = sst [smem:[#allocation12_spill]] %s1366_s12  ;;  %s184_s26 = scalar_lea.vmem [#allocation2], %s929_s13 }
  0x1c   : > { %s194_s30 = sshll.u32 %s184_s26, 4  ;;  %s931_s9 = sshll.u32 %s188_s18, 2  ;;  %s195_s30 = int_to_ptr.vmem [resolvable:$true] %s194_s30 }
  0x1d   : > { %s1623_s0 = sld [smem:[#allocation13_spill]]  ;;  %p987_p13 = pnand %p993_p12, %p1338_p5 }
  0x1e   : > { %p935_p0 = scmp.ge.s32.totalorder %s1239_s25, 1  ;;  %s181_s13 = scalar_lea.sflag [#allocation3], %s180_s11 }
  0x1f   : > { %p219_p1 = scmp.lt.s32.totalorder %s1239_s25, 5  ;;  %s67_s18 = sadd.s32 1, %s1207_s17 }
  0x20   : > { %p74_p4 = scmp.ne.s32.totalorder %s1207_s17, %s1203_s16  ;;  %p80_p10 = scmp.ne.s32.totalorder %s1203_s16, %s1199_s15 }
  0x21   : > { %p1379_p3 = pnand %p935_p0, %p219_p1  ;;  %s201_s28 = sand.u32 1, %s1207_s17  }
  0x22   : > { %s1388_s27 = scalar_select %p65_p9, %s1207_s17, %s67_s18  }
  0x23   : > { %s190_s29 = scalar_lea.hbm %s1623_s0, %s931_s9  ;;  %p76_p8 = por %p74_p4, %p49_p2 }
  0x24   : > { %s192_s12 = sshll.u32 %s190_s29, 4  ;;  %s976_s5 = sshll.u32 %s1235_s24, 3  ;;  %s193_s12 = int_to_ptr.hbm [resolvable:$true] %s192_s12 }
  0x25   : > { %989 = dma.hbm_to_vmem [thread:$0]  (!%p987_p13), %s193_s12, 64, %s195_s30, %s181_s13  }
  0x26   : > { %p1398_p5 = por %p80_p10, %p1342_p6  ;;  %s932_s12 = sshll.u32 %s201_s28, 3 }
  0x27   : > { %s210_s9 = scalar_lea.hbm %s1607_s1, %s976_s5  ;;  %s205_s8 = scalar_lea.vmem [#allocation4], %s932_s12 }
  0x28   : > { %s212_s29 = sshll.u32 %s210_s9, 4  ;;  %s214_s13 = sshll.u32 %s205_s8, 4  ;;  %s213_s29 = int_to_ptr.hbm [resolvable:$true] %s212_s29  ;;  %s215_s13 = int_to_ptr.vmem [resolvable:$true] %s214_s13 }
  0x29   : > { %p990_p2 = pnand %p993_p12, %p76_p8  ;;  %s202_s15 = scalar_lea.sflag [#allocation5], %s201_s28 }
  0x2a   : > { %223 = sbr.rel (%p1379_p3) target bundleno = 621 (0x26d), region = 36  ;;  %s225_s6 = sand.u32 (!%p1379_p3), 1, %s1215_s19  }
  0x2b   : > { %992 = dma.hbm_to_vmem [thread:$0]  (!%p990_p2), %s213_s29, 128, %s215_s13, %s202_s15  }
  0x2c   : > { %s936_s18 = sshll.u32 (!%p1379_p3), %s225_s6, 2  ;;  %s226_s0 = scalar_lea.sflag (!%p1379_p3), [#allocation3], %s225_s6 }
  0x2d   : > { %s229_s24 = scalar_lea.vmem (!%p1379_p3), [#allocation2], %s936_s18 }
  0x2f   : > { %1190 = dma.done.wait (%p1350_p7), %s226_s0, 64  }
  0x30   : > { %1192 = vsyncadd (%p1350_p7), %s226_s0, 4294967232  ;;  %s235_s5 = sand.u32 1, %s1203_s16  }
  0x31   : > { %s937_s12 = sshll.u32 %s235_s5, 3  ;;  %s236_s28 = scalar_lea.sflag [#allocation5], %s235_s5 }
  0x32   : > { %s239_s26 = scalar_lea.vmem [#allocation4], %s937_s12 }
  0x33   : > { %1194 = dma.done.wait (%p1398_p5), %s236_s28, 128  }
  0x34   : > { %1196 = vsyncadd (%p1398_p5), %s236_s28, 4294967168  ;;  %v306_v0 = vld [vmem:[%s239_s26] sm:$0xff]  ;;  %s980_s14 = smul.u32 264, %s225_s6  ;;  %v269_v3 = vld [vmem:[%s229_s24] sm:$0xf]  ;;  %vm282_vm0 = vcmask 1043456  }
  0x35   : > { %308 = vst [vmem:[#allocation1] ss:$2 sm:$0xff] %v306_v0  ;;  %v271_v4 = vld [vmem:[%s1608_s2] sm:$0xf]  ;;  %vm278_vm1 = vcmask 31744   ;;  %938 = vmatpush.msk.msra.mxu0 %vm282_vm0, %v269_v3  ;;  %v1241_v5 = vmov 0  }
  0x36   : > { %s1422_s30 = scalar_lea.vmem [#allocation6], %s980_s14  ;;  %939 = vmatmul.msk.f32.vlgmr.msra.gmra.mxu0 %vm278_vm1, %v271_v4  ;;  %v272_v11 = vld [vmem:[%s1609_s3] sm:$0xf]  ;;  %s981_s9 = smul.u32 (%p1359_p11), 66, %s1227_s22 }
  0x37   : > { %270 = vst [vmem:[%s1422_s30] sm:$0xf] %v269_v3 }
  0x38   : > { %s661_s29 = sadd.s32 (%p1359_p11), %s1223_s21, %s981_s9 }
  0x39   : > { %s973_s8 = sshll.u32 (%p1359_p11), %s661_s29, 3 }
  0x3a   : > { %s1507_s10 = scalar_lea.vmem (%p1359_p11), %s1610_s4, %s973_s8 }
  0x3c   : > { %v309_v1 = vld.sshfl [vmem:[#allocation1] sm:$0xff pattern:$0x75316420]  ;;  %v310_v2 = vld.sshfl [vmem:[#allocation1 + $0x8] sm:$0xff pattern:$0x75316420] }
  0x3d   : > { %313 = vxpose.xlu0.b32.start.end [1/1] (short) %v309_v1, 128  ;;  %345 = vxpose.xlu1.b32.start.end [1/1] (short) %v310_v2, 128 }
  0xa4   : > { %1084 = vset.pattern.permute.xlu0 %v1241_v5 }
  0xb3   : > { %v303_v32 = vpop.f32.mrf.mxu0 }
  0xe1   : > { %v329_v6 = vpop.trf.xlu0  ;;  %v361_v15 = vpop.trf.xlu1 }
  0xe9   : > { %v330_v7 = vpop.trf.xlu0  ;;  %v362_v17 = vpop.trf.xlu1 }
  0xf1   : > { %v331_v8 = vpop.trf.xlu0  ;;  %v363_v19 = vpop.trf.xlu1 }
  0xf9   : > { %v332_v9 = vpop.trf.xlu0  ;;  %v364_v21 = vpop.trf.xlu1 }
 0x101   : > { %v333_v10 = vpop.trf.xlu0  ;;  %v365_v23 = vpop.trf.xlu1 }
 0x109   : > { %v334_v12 = vpop.trf.xlu0  ;;  %v366_v25 = vpop.trf.xlu1 }
 0x111   : > { %v335_v13 = vpop.trf.xlu0  ;;  %v367_v27 = vpop.trf.xlu1 }
 0x119   : > { %v336_v14 = vpop.trf.xlu0  ;;  %v368_v29 = vpop.trf.xlu1 }
 0x121   : > { %v337_v16 = vpop.trf.xlu0  ;;  %v369_v31 = vpop.trf.xlu1 }
 0x123   : > { %275 = vperm.xlu0 %1084, %v272_v11  }
 0x129   : > { %v338_v18 = vpop.trf.xlu0  ;;  %v370_v35 = vpop.trf.xlu1 }
 0x131   : > { %v339_v20 = vpop.trf.xlu0  ;;  %v371_v36 = vpop.trf.xlu1 }
 0x139   : > { %v340_v22 = vpop.trf.xlu0  ;;  %v372_v37 = vpop.trf.xlu1 }
 0x141   : > { %v341_v24 = vpop.trf.xlu0  ;;  %v373_v38 = vpop.trf.xlu1 }
 0x149   : > { %v342_v26 = vpop.trf.xlu0  ;;  %v374_v39 = vpop.trf.xlu1 }
 0x151   : > { %v343_v28 = vpop.trf.xlu0  ;;  %v375_v40 = vpop.trf.xlu1 }
 0x159   : > { %v344_v30 = vpop.trf.xlu0  ;;  %v376_v41 = vpop.trf.xlu1 }
 0x195   : > { %v276_v33 = vpop.permute.xlu0 %275 }
 0x196   : > { %v304_v34 = vadd.f32 %v303_v32, %v276_v33 }
 0x198   : > { %940 = vmatpush.msk.msrb.mxu0 %vm282_vm0, %v304_v34  ;;  %977 = vmatpush.msk.msra.mxu1 %vm282_vm0, %v304_v34 }
 0x199   : > { %978 = vmatpush.msk.msra.mxu2 %vm282_vm0, %v304_v34  ;;  %979 = vmatpush.msk.msra.mxu3 %vm282_vm0, %v304_v34 }
 0x19a   : > { %941 = vmatmul.msk.f32.vlgmr.msrb.gmra.mxu0 %vm278_vm1, %v329_v6  ;;  %946 = vmatmul.msk.f32.vlgmr.msra.gmra.mxu1 %vm278_vm1, %v334_v12 }
 0x19b   : > { %955 = vmatmul.msk.f32.vlgmr.msra.gmra.mxu2 %vm278_vm1, %v343_v28  ;;  %964 = vmatmul.msk.f32.vlgmr.msra.gmra.mxu3 %vm278_vm1, %v368_v29 }
 0x1a2   : > { %942 = vmatmul.msk.f32.gmra.mxu0 %vm278_vm1, %v330_v7  ;;  %947 = vmatmul.msk.f32.gmra.mxu1 %vm278_vm1, %v335_v13 }
 0x1a3   : > { %956 = vmatmul.msk.f32.gmra.mxu2 %vm278_vm1, %v344_v30  ;;  %965 = vmatmul.msk.f32.gmra.mxu3 %vm278_vm1, %v369_v31 }
 0x1aa   : > { %943 = vmatmul.msk.f32.gmra.mxu0 %vm278_vm1, %v331_v8  ;;  %948 = vmatmul.msk.f32.gmra.mxu1 %vm278_vm1, %v336_v14 }
 0x1ab   : > { %957 = vmatmul.msk.f32.gmra.mxu2 %vm278_vm1, %v361_v15  ;;  %966 = vmatmul.msk.f32.gmra.mxu3 %vm278_vm1, %v370_v35 }
 0x1b2   : > { %944 = vmatmul.msk.f32.gmra.mxu0 %vm278_vm1, %v332_v9  ;;  %949 = vmatmul.msk.f32.gmra.mxu1 %vm278_vm1, %v337_v16 }
 0x1b3   : > { %958 = vmatmul.msk.f32.gmra.mxu2 %vm278_vm1, %v362_v17  ;;  %967 = vmatmul.msk.f32.gmra.mxu3 %vm278_vm1, %v371_v36 }
 0x1ba   : > { %945 = vmatmul.msk.f32.gmra.mxu0 %vm278_vm1, %v333_v10  ;;  %950 = vmatmul.msk.f32.gmra.mxu1 %vm278_vm1, %v338_v18 }
 0x1bb   : > { %959 = vmatmul.msk.f32.gmra.mxu2 %vm278_vm1, %v363_v19  ;;  %968 = vmatmul.msk.f32.gmra.mxu3 %vm278_vm1, %v372_v37 }
 0x1c2   : > { %951 = vmatmul.msk.f32.gmra.mxu1 %vm278_vm1, %v339_v20 }
 0x1c3   : > { %960 = vmatmul.msk.f32.gmra.mxu2 %vm278_vm1, %v364_v21  ;;  %969 = vmatmul.msk.f32.gmra.mxu3 %vm278_vm1, %v373_v38 }
 0x1ca   : > { %952 = vmatmul.msk.f32.gmra.mxu1 %vm278_vm1, %v340_v22 }
 0x1cb   : > { %961 = vmatmul.msk.f32.gmra.mxu2 %vm278_vm1, %v365_v23  ;;  %970 = vmatmul.msk.f32.gmra.mxu3 %vm278_vm1, %v374_v39 }
 0x1d2   : > { %953 = vmatmul.msk.f32.gmra.mxu1 %vm278_vm1, %v341_v24 }
 0x1d3   : > { %962 = vmatmul.msk.f32.gmra.mxu2 %vm278_vm1, %v366_v25  ;;  %971 = vmatmul.msk.f32.gmra.mxu3 %vm278_vm1, %v375_v40 }
 0x1da   : > { %954 = vmatmul.msk.f32.gmra.mxu1 %vm278_vm1, %v342_v26 }
 0x1db   : > { %963 = vmatmul.msk.f32.gmra.mxu2 %vm278_vm1, %v367_v27  ;;  %972 = vmatmul.msk.f32.gmra.mxu3 %vm278_vm1, %v376_v41 }
 0x217   : > { %v493_v42 = vpop.f32.mrf.mxu0  ;;  %v508_v43 = vpop.f32.mrf.mxu1 }
 0x218   : > { %v589_v44 = vmax.f32 %v493_v42, 0.0  ;;  %v594_v45 = vmax.f32 %v508_v43, 0.0 }
 0x21a   : > { %621 = vst [vmem:[%s1422_s30 + $0x4] sm:$0xff] %v589_v44 }
 0x21b   : > { %626 = vst [vmem:[%s1422_s30 + $0x2c] sm:$0xff] %v594_v45 }
 0x21e   : > { %v535_v46 = vpop.f32.mrf.mxu2  ;;  %v562_v47 = vpop.f32.mrf.mxu3 }
 0x21f   : > { %v603_v48 = vmax.f32 %v535_v46, 0.0  ;;  %v612_v49 = vmax.f32 %v562_v47, 0.0  ;;  %v496_v50 = vpop.f32.mrf.mxu0  ;;  %v511_v51 = vpop.f32.mrf.mxu1 }
 0x220   : > { %v590_v52 = vmax.f32 %v496_v50, 0.0  ;;  %v595_v53 = vmax.f32 %v511_v51, 0.0 }
 0x221   : > { %635 = vst [vmem:[%s1422_s30 + $0x74] sm:$0xff] %v603_v48  ;;  %v756_v42 = vld [vmem:[%s1422_s30] sm:$0xff] (%p1359_p11) }
 0x222   : > { %644 = vst [vmem:[%s1422_s30 + $0xbc] sm:$0xff] %v612_v49 }
 0x223   : > { %622 = vst [vmem:[%s1422_s30 + $0xc] sm:$0xff] %v590_v52 }
 0x224   : > { %627 = vst [vmem:[%s1422_s30 + $0x34] sm:$0xff] %v595_v53 }
 0x225   : > { %757 = vst [vmem:[%s1507_s10] sm:$0xff] (%p1359_p11), %v756_v42 }
 0x226   : > { %v538_v54 = vpop.f32.mrf.mxu2  ;;  %v565_v55 = vpop.f32.mrf.mxu3 }
 0x227   : > { %v604_v56 = vmax.f32 %v538_v54, 0.0  ;;  %v613_v57 = vmax.f32 %v565_v55, 0.0  ;;  %v499_v58 = vpop.f32.mrf.mxu0  ;;  %v514_v59 = vpop.f32.mrf.mxu1 }
 0x228   : > { %v591_v60 = vmax.f32 %v499_v58, 0.0  ;;  %v596_v61 = vmax.f32 %v514_v59, 0.0 }
 0x229   : > { %636 = vst [vmem:[%s1422_s30 + $0x7c] sm:$0xff] %v604_v56 }
 0x22a   : > { %645 = vst [vmem:[%s1422_s30 + $0xc4] sm:$0xff] %v613_v57  ;;  %v758_v43 = vld [vmem:[%s1422_s30 + $0x8] sm:$0xff] (%p1359_p11) }
 0x22b   : > { %623 = vst [vmem:[%s1422_s30 + $0x14] sm:$0xff] %v591_v60  ;;  %v768_v48 = vld [vmem:[%s1422_s30 + $0x30] sm:$0xff] (%p1359_p11) }
 0x22c   : > { %628 = vst [vmem:[%s1422_s30 + $0x3c] sm:$0xff] %v596_v61 }
 0x22d   : > { %759 = vst [vmem:[%s1507_s10 + $0x10] sm:$0xff] (%p1359_p11), %v758_v43 }
 0x22e   : > { %v541_v62 = vpop.f32.mrf.mxu2  ;;  %v568_v63 = vpop.f32.mrf.mxu3  ;;  %769 = vst [vmem:[%s1507_s10 + $0x60] sm:$0xff] (%p1359_p11), %v768_v48 }
 0x22f   : > { %v605_v0 = vmax.f32 %v541_v62, 0.0  ;;  %v614_v1 = vmax.f32 %v568_v63, 0.0  ;;  %v502_v2 = vpop.f32.mrf.mxu0  ;;  %v517_v3 = vpop.f32.mrf.mxu1 }
 0x230   : > { %v592_v4 = vmax.f32 %v502_v2, 0.0  ;;  %v597_v5 = vmax.f32 %v517_v3, 0.0  ;;  %v786_v57 = vld [vmem:[%s1422_s30 + $0x78] sm:$0xff] (%p1359_p11) }
 0x231   : > { %637 = vst [vmem:[%s1422_s30 + $0x84] sm:$0xff] %v605_v0  ;;  %v804_v2 = vld [vmem:[%s1422_s30 + $0xc0] sm:$0xff] (%p1359_p11) }
 0x232   : > { %646 = vst [vmem:[%s1422_s30 + $0xcc] sm:$0xff] %v614_v1  ;;  %v760_v44 = vld [vmem:[%s1422_s30 + $0x10] sm:$0xff] (%p1359_p11) }
 0x233   : > { %624 = vst [vmem:[%s1422_s30 + $0x1c] sm:$0xff] %v592_v4  ;;  %v770_v49 = vld [vmem:[%s1422_s30 + $0x38] sm:$0xff] (%p1359_p11) }
 0x234   : > { %629 = vst [vmem:[%s1422_s30 + $0x44] sm:$0xff] %v597_v5 }
 0x235   : > { %761 = vst [vmem:[%s1507_s10 + $0x20] sm:$0xff] (%p1359_p11), %v760_v44 }
 0x236   : > { %v544_v6 = vpop.f32.mrf.mxu2  ;;  %v571_v7 = vpop.f32.mrf.mxu3  ;;  %771 = vst [vmem:[%s1507_s10 + $0x70] sm:$0xff] (%p1359_p11), %v770_v49 }
 0x237   : > { %v606_v8 = vmax.f32 %v544_v6, 0.0  ;;  %v615_v9 = vmax.f32 %v571_v7, 0.0  ;;  %v505_v10 = vpop.f32.mrf.mxu0  ;;  %v520_v11 = vpop.f32.mrf.mxu1  ;;  %787 = vst [vmem:[%s1507_s10 + $0xf0] sm:$0xff] (%p1359_p11), %v786_v57 }
 0x238   : > { %v593_v12 = vmax.f32 %v505_v10, 0.0  ;;  %v598_v13 = vmax.f32 %v520_v11, 0.0  ;;  %v788_v58 = vld [vmem:[%s1422_s30 + $0x80] sm:$0xff] (%p1359_p11)  ;;  %805 = vst [vmem:[%s1507_s10 + $0x180] sm:$0xff] (%p1359_p11), %v804_v2 }
 0x239   : > { %638 = vst [vmem:[%s1422_s30 + $0x8c] sm:$0xff] %v606_v8  ;;  %v806_v3 = vld [vmem:[%s1422_s30 + $0xc8] sm:$0xff] (%p1359_p11) }
 0x23a   : > { %647 = vst [vmem:[%s1422_s30 + $0xd4] sm:$0xff] %v615_v9  ;;  %v762_v45 = vld [vmem:[%s1422_s30 + $0x18] sm:$0xff] (%p1359_p11) }
 0x23b   : > { %625 = vst [vmem:[%s1422_s30 + $0x24] sm:$0xff] %v593_v12  ;;  %v772_v50 = vld [vmem:[%s1422_s30 + $0x40] sm:$0xff] (%p1359_p11) }
 0x23c   : > { %630 = vst [vmem:[%s1422_s30 + $0x4c] sm:$0xff] %v598_v13 }
 0x23d   : > { %763 = vst [vmem:[%s1507_s10 + $0x30] sm:$0xff] (%p1359_p11), %v762_v45 }
 0x23e   : > { %v547_v14 = vpop.f32.mrf.mxu2  ;;  %v574_v15 = vpop.f32.mrf.mxu3  ;;  %773 = vst [vmem:[%s1507_s10 + $0x80] sm:$0xff] (%p1359_p11), %v772_v50 }
 0x23f   : > { %v607_v16 = vmax.f32 %v547_v14, 0.0  ;;  %v616_v17 = vmax.f32 %v574_v15, 0.0  ;;  %v523_v18 = vpop.f32.mrf.mxu1  ;;  %789 = vst [vmem:[%s1507_s10 + $0x100] sm:$0xff] (%p1359_p11), %v788_v58 }
 0x240   : > { %v599_v19 = vmax.f32 %v523_v18, 0.0  ;;  %v790_v59 = vld [vmem:[%s1422_s30 + $0x88] sm:$0xff] (%p1359_p11)  ;;  %807 = vst [vmem:[%s1507_s10 + $0x190] sm:$0xff] (%p1359_p11), %v806_v3 }
 0x241   : > { %639 = vst [vmem:[%s1422_s30 + $0x94] sm:$0xff] %v607_v16  ;;  %v808_v4 = vld [vmem:[%s1422_s30 + $0xd0] sm:$0xff] (%p1359_p11) }
 0x242   : > { %648 = vst [vmem:[%s1422_s30 + $0xdc] sm:$0xff] %v616_v17  ;;  %v764_v46 = vld [vmem:[%s1422_s30 + $0x20] sm:$0xff] (%p1359_p11)  ;;  %v766_v47 = vld [vmem:[%s1422_s30 + $0x28] sm:$0xff] (%p1359_p11) }
 0x243   : > { %631 = vst [vmem:[%s1422_s30 + $0x54] sm:$0xff] %v599_v19  ;;  %v774_v51 = vld [vmem:[%s1422_s30 + $0x48] sm:$0xff] (%p1359_p11) }
 0x244   : > { %765 = vst [vmem:[%s1507_s10 + $0x40] sm:$0xff] (%p1359_p11), %v764_v46 }
 0x245   : > { %767 = vst [vmem:[%s1507_s10 + $0x50] sm:$0xff] (%p1359_p11), %v766_v47 }
 0x246   : > { %v550_v20 = vpop.f32.mrf.mxu2  ;;  %v577_v21 = vpop.f32.mrf.mxu3  ;;  %775 = vst [vmem:[%s1507_s10 + $0x90] sm:$0xff] (%p1359_p11), %v774_v51 }
 0x247   : > { %v608_v22 = vmax.f32 %v550_v20, 0.0  ;;  %v617_v23 = vmax.f32 %v577_v21, 0.0  ;;  %v526_v24 = vpop.f32.mrf.mxu1  ;;  %791 = vst [vmem:[%s1507_s10 + $0x110] sm:$0xff] (%p1359_p11), %v790_v59 }
 0x248   : > { %v600_v25 = vmax.f32 %v526_v24, 0.0  ;;  %v792_v60 = vld [vmem:[%s1422_s30 + $0x90] sm:$0xff] (%p1359_p11)  ;;  %809 = vst [vmem:[%s1507_s10 + $0x1a0] sm:$0xff] (%p1359_p11), %v808_v4 }
 0x249   : > { %640 = vst [vmem:[%s1422_s30 + $0x9c] sm:$0xff] %v608_v22  ;;  %v810_v5 = vld [vmem:[%s1422_s30 + $0xd8] sm:$0xff] (%p1359_p11) }
 0x24a   : > { %649 = vst [vmem:[%s1422_s30 + $0xe4] sm:$0xff] %v617_v23  ;;  %v776_v52 = vld [vmem:[%s1422_s30 + $0x50] sm:$0xff] (%p1359_p11) }
 0x24b   : > { %632 = vst [vmem:[%s1422_s30 + $0x5c] sm:$0xff] %v600_v25 }
 0x24c   : > { %777 = vst [vmem:[%s1507_s10 + $0xa0] sm:$0xff] (%p1359_p11), %v776_v52 }
 0x24d   : > { %793 = vst [vmem:[%s1507_s10 + $0x120] sm:$0xff] (%p1359_p11), %v792_v60 }
 0x24e   : > { %v553_v26 = vpop.f32.mrf.mxu2  ;;  %v580_v27 = vpop.f32.mrf.mxu3  ;;  %811 = vst [vmem:[%s1507_s10 + $0x1b0] sm:$0xff] (%p1359_p11), %v810_v5 }
 0x24f   : > { %v609_v28 = vmax.f32 %v553_v26, 0.0  ;;  %v618_v29 = vmax.f32 %v580_v27, 0.0  ;;  %v529_v30 = vpop.f32.mrf.mxu1 }
 0x250   : > { %v601_v31 = vmax.f32 %v529_v30, 0.0  ;;  %v794_v61 = vld [vmem:[%s1422_s30 + $0x98] sm:$0xff] (%p1359_p11) }
 0x251   : > { %641 = vst [vmem:[%s1422_s30 + $0xa4] sm:$0xff] %v609_v28  ;;  %v812_v6 = vld [vmem:[%s1422_s30 + $0xe0] sm:$0xff] (%p1359_p11) }
 0x252   : > { %650 = vst [vmem:[%s1422_s30 + $0xec] sm:$0xff] %v618_v29  ;;  %v778_v53 = vld [vmem:[%s1422_s30 + $0x58] sm:$0xff] (%p1359_p11) }
 0x253   : > { %633 = vst [vmem:[%s1422_s30 + $0x64] sm:$0xff] %v601_v31 }
 0x254   : > { %779 = vst [vmem:[%s1507_s10 + $0xb0] sm:$0xff] (%p1359_p11), %v778_v53 }
 0x255   : > { %795 = vst [vmem:[%s1507_s10 + $0x130] sm:$0xff] (%p1359_p11), %v794_v61 }
 0x256   : > { %v556_v32 = vpop.f32.mrf.mxu2  ;;  %v583_v33 = vpop.f32.mrf.mxu3  ;;  %813 = vst [vmem:[%s1507_s10 + $0x1c0] sm:$0xff] (%p1359_p11), %v812_v6 }
 0x257   : > { %v610_v34 = vmax.f32 %v556_v32, 0.0  ;;  %v619_v35 = vmax.f32 %v583_v33, 0.0  ;;  %v532_v36 = vpop.f32.mrf.mxu1 }
 0x258   : > { %v602_v37 = vmax.f32 %v532_v36, 0.0  ;;  %v796_v62 = vld [vmem:[%s1422_s30 + $0xa0] sm:$0xff] (%p1359_p11) }
 0x259   : > { %642 = vst [vmem:[%s1422_s30 + $0xac] sm:$0xff] %v610_v34  ;;  %v814_v7 = vld [vmem:[%s1422_s30 + $0xe8] sm:$0xff] (%p1359_p11) }
 0x25a   : > { %651 = vst [vmem:[%s1422_s30 + $0xf4] sm:$0xff] %v619_v35  ;;  %v780_v54 = vld [vmem:[%s1422_s30 + $0x60] sm:$0xff] (%p1359_p11) }
 0x25b   : > { %634 = vst [vmem:[%s1422_s30 + $0x6c] sm:$0xff] %v602_v37 }
 0x25c   : > { %781 = vst [vmem:[%s1507_s10 + $0xc0] sm:$0xff] (%p1359_p11), %v780_v54 }
 0x25d   : > { %797 = vst [vmem:[%s1507_s10 + $0x140] sm:$0xff] (%p1359_p11), %v796_v62 }
 0x25e   : > { %v559_v38 = vpop.f32.mrf.mxu2  ;;  %v586_v39 = vpop.f32.mrf.mxu3  ;;  %659 = sbr.rel (!%p1359_p11) target bundleno = 621 (0x26d), region = 48  ;;  %815 = vst [vmem:[%s1507_s10 + $0x1d0] sm:$0xff] (%p1359_p11), %v814_v7 }
 0x25f   : > { %v611_v40 = vmax.f32 %v559_v38, 0.0  ;;  %v620_v41 = vmax.f32 %v586_v39, 0.0 }
 0x260   : > { %v798_v63 = vld [vmem:[%s1422_s30 + $0xa8] sm:$0xff] (%p1359_p11) }
 0x261   : > { %643 = vst [vmem:[%s1422_s30 + $0xb4] sm:$0xff] %v611_v40  ;;  %v816_v8 = vld [vmem:[%s1422_s30 + $0xf0] sm:$0xff] (%p1359_p11) }
 0x262   : > { %652 = vst [vmem:[%s1422_s30 + $0xfc] sm:$0xff] %v620_v41  ;;  %v782_v55 = vld [vmem:[%s1422_s30 + $0x68] sm:$0xff] (%p1359_p11)  ;;  %v784_v56 = vld [vmem:[%s1422_s30 + $0x70] sm:$0xff] (%p1359_p11) }
 0x263   : > { %783 = vst [vmem:[%s1507_s10 + $0xd0] sm:$0xff] %v782_v55 }
 0x264   : > { %785 = vst [vmem:[%s1507_s10 + $0xe0] sm:$0xff] %v784_v56 }
 0x265   : > { %799 = vst [vmem:[%s1507_s10 + $0x150] sm:$0xff] %v798_v63 }
 0x266   : > { %817 = vst [vmem:[%s1507_s10 + $0x1e0] sm:$0xff] %v816_v8 }
 0x268   : > { %v800_v0 = vld [vmem:[%s1422_s30 + $0xb0] sm:$0xff]  ;;  %v802_v1 = vld [vmem:[%s1422_s30 + $0xb8] sm:$0xff] }
 0x269   : > { %801 = vst [vmem:[%s1507_s10 + $0x160] sm:$0xff] %v800_v0  ;;  %v818_v9 = vld [vmem:[%s1422_s30 + $0xf8] sm:$0xff]  ;;  %v820_v10 = vld [vmem:[%s1422_s30 + $0x100] sm:$0xff] }
 0x26a   : > { %803 = vst [vmem:[%s1507_s10 + $0x170] sm:$0xff] %v802_v1 }
 0x26b   : > { %819 = vst [vmem:[%s1507_s10 + $0x1f0] sm:$0xff] %v818_v9 }
 0x26c   : > { %821 = vst [vmem:[%s1507_s10 + $0x200] sm:$0xff] %v820_v10 }
 0x26d PF: > { %s20_s25 = sadd.s32 1, %s1239_s25   ;;  %s1626_s21 = sld [smem:[#allocation12_spill]] }
 0x26e   : > { %p17_p6 = scmp.ge.s32.totalorder %s20_s25, 6   ;;  %s1627_s22 = sld [smem:[#allocation9_spill]] }
 0x26f   : > { %s1628_s6 = sld [smem:[#allocation10_spill]]  ;;  %s1630_s15 = smov %s1203_s16 }
 0x270   : > { %s1629_s24 = sld [smem:[#allocation11_spill]]  ;;  %s1631_s16 = smov %s1207_s17 }
 0x271   : > { %s1632_s17 = smov %s1388_s27  ;;  %s1633_s18 = smov %s1215_s19 }
 0x272   : > { %s1634_s19 = smov %s1219_s20  ;;  %19 = sbr.rel (!%p17_p6) target bundleno = 11 (0xb), region = 127 }
 0x273   : > { %s1635_s20 = smov %s1626_s21  ;;  %s1636_s21 = smov %s1231_s23 }
 0x275   : > { %s1637_s23 = smov %s1628_s6 }
 0x277   :  { %837 = vsyncpa [#allocation3], 1 }
 0x278   :  { %839 = vsyncpa [#allocation3 + $0x1], 1 }
 0x279   :  { %840 = vsyncpa [#allocation5], 1 }
 0x27a   :  { %842 = vsyncpa [#allocation5 + $0x1], 1 }

</bundles_post_ra>
